<compile_context>
chip_gen: v7x
topology: tpu7x:2x2x1
jax: 0.10.0
libtpu: 0.0.40
codegen_flags: <defaults>
</compile_context>

<pallas_src>
import functools

import jax
import jax.numpy as jnp
from jax.experimental import pallas as pl
from jax.experimental.pallas import tpu as pltpu


def _round_up(x: int, m: int) -> int:
    return ((x + m - 1) // m) * m


def _num_tensorcores_per_chip() -> int:
    """Best-effort detection: v7x has 2 TensorCores per chip, older TPUs 1."""
    try:
        kind = jax.devices()[0].device_kind.lower()
    except Exception:
        return 1
    if "v7" in kind or "7x" in kind:
        return 2
    return 1


def _sublane_pack(itemsize: int) -> int:
    if itemsize >= 4:
        return 8
    if itemsize == 2:
        return 16
    return 32


def _pick_tiles(B: int, D: int, itemsize: int, min_feature_blocks: int):
    """Choose (tile_b, tile_d). Caller pads B/D up to multiples of the tiles."""
    pack = _sublane_pack(itemsize)

    # Batch tile: full (pack-rounded) batch if small, else cap at 1024
    # (1024 is a multiple of 8/16/32, so it always respects the pack).
    max_tb = 1024
    tile_b = _round_up(B, pack) if B <= max_tb else max_tb

    # Feature tile: ~16 MiB per pipeline buffer, multiple of 128.
    budget_elems = (16 * 1024 * 1024) // itemsize
    cap = max(128, (budget_elems // tile_b) // 128 * 128)
    full_rows = _round_up(D, 128)
    tile_d = min(full_rows, cap)

    # v7x: guarantee >= 2 feature blocks so both TensorCores get work.
    if min_feature_blocks >= 2 and tile_d >= full_rows and D >= 256:
        tile_d = _round_up(D, 256) // 2   # 2 blocks, each a multiple of 128

    return tile_b, tile_d


def _flops_kernel_multi(x_ref, o_ref, acc_ref, *, inv_b):
    """Grid = (feature blocks, batch blocks); batch axis is the reduction."""
    b = pl.program_id(1)

    @pl.when(b == 0)
    def _():
        acc_ref[...] = jnp.zeros_like(acc_ref)

    x = jnp.abs(x_ref[...]).astype(jnp.float32)          # (tile_b, tile_d)
    tb, td = x.shape
    if tb % 8 == 0 and tb >= 8:
        # Fold batch rows into 8 sublane partials: layout-aligned reshape
        # (splits the sublane-major dim) + VALU adds only.
        acc_ref[...] += x.reshape(tb // 8, 8, td).sum(axis=0)
    else:
        acc_ref[0:1, :] += x.sum(axis=0, keepdims=True)

    @pl.when(b == pl.num_programs(1) - 1)
    def _():
        col_sum = jnp.sum(acc_ref[...], axis=0, keepdims=True)   # (1, tile_d)
        mean = col_sum * inv_b
        o_ref[...] = mean * mean                                 # lane-dense store


def _flops_kernel_single(x_ref, o_ref, *, inv_b):
    """Single batch step: no accumulator scratch, direct epilogue."""
    x = jnp.abs(x_ref[...]).astype(jnp.float32)
    mean = jnp.sum(x, axis=0, keepdims=True) * inv_b
    o_ref[...] = mean * mean


def flops_loss(batch_rep: jax.Array, tile_b: int | None = None,
               tile_d: int | None = None) -> jax.Array:
    """Pallas implementation of FLOPS.forward: sum(mean(|x|, axis=0) ** 2)."""
    B, D = batch_rep.shape
    itemsize = jnp.dtype(batch_rep.dtype).itemsize

    auto_b, auto_d = _pick_tiles(B, D, itemsize, _num_tensorcores_per_chip())
    tile_b = auto_b if tile_b is None else tile_b
    tile_d = auto_d if tile_d is None else tile_d

    # Zero-pad to tile multiples: |0| rows add 0 to the column sums (inv_b uses
    # the true B), padded zero columns contribute 0 to the final sum.
    B_pad = _round_up(B, tile_b)
    D_pad = _round_up(D, tile_d)
    if (B_pad, D_pad) != (B, D):
        batch_rep = jnp.pad(batch_rep, ((0, B_pad - B), (0, D_pad - D)))

    nd = D_pad // tile_d
    nb = B_pad // tile_b
    inv_b = float(1.0 / B)

    # VMEM limit sized to actual need (double-buffered input + output + scratch)
    # plus a little headroom; avoids reserving 3x the v5e scoped default.
    tile_bytes = tile_b * tile_d * itemsize
    vmem_need = 2 * tile_bytes + 2 * tile_d * 4 + 8 * tile_d * 4 + (2 << 20)
    vmem_limit = int(min(max(vmem_need, 8 << 20), 56 << 20))

    cost = pl.CostEstimate(
        flops=2 * B_pad * D_pad,
        transcendentals=0,
        bytes_accessed=B_pad * D_pad * itemsize + D_pad * 4,
    )

    if nb == 1:
        # Single-step reduction: skip accumulator path entirely.
        kernel = functools.partial(_flops_kernel_single, inv_b=inv_b)
        sq_means = pl.pallas_call(
            kernel,
            out_shape=jax.ShapeDtypeStruct((1, D_pad), jnp.float32),
            grid=(nd,),
            in_specs=[pl.BlockSpec((tile_b, tile_d), lambda i: (0, i))],
            out_specs=pl.BlockSpec((1, tile_d), lambda i: (0, i)),
            compiler_params=pltpu.CompilerParams(
                dimension_semantics=("parallel",),
                vmem_limit_bytes=vmem_limit,
            ),
            cost_estimate=cost,
        )(batch_rep)
    else:
        kernel = functools.partial(_flops_kernel_multi, inv_b=inv_b)
        sq_means = pl.pallas_call(
            kernel,
            out_shape=jax.ShapeDtypeStruct((1, D_pad), jnp.float32),
            grid=(nd, nb),  # (parallel feature axis, batch reduction axis last)
            in_specs=[pl.BlockSpec((tile_b, tile_d), lambda i, b: (b, i))],
            out_specs=pl.BlockSpec((1, tile_d), lambda i, b: (0, i)),
            scratch_shapes=[pltpu.VMEM((8, tile_d), jnp.float32)],
            compiler_params=pltpu.CompilerParams(
                dimension_semantics=("parallel", "arbitrary"),
                vmem_limit_bytes=vmem_limit,
            ),
            cost_estimate=cost,
        )(batch_rep)

    # Tiny final reduction over D (D*4 bytes) done in plain XLA.
    return jnp.sum(sq_means)


if __name__ == "__main__":
    key = jax.random.PRNGKey(0)

    # Small batch of sparse representations (single-step kernel path).
    B, D = 8, 256
    batch_rep = jax.random.normal(key, (B, D), dtype=jnp.float32)
    result = jax.block_until_ready(flops_loss(batch_rep))
    ref = jnp.sum(jnp.mean(jnp.abs(batch_rep), axis=0) ** 2)
    assert jnp.allclose(result, ref, rtol=1e-5, atol=1e-5), (result, ref)

    # Multi-block path (feature + batch tiling with accumulator).
    B2, D2 = 64, 1024
    x2 = jax.random.normal(jax.random.PRNGKey(1), (B2, D2), dtype=jnp.float32)
    r2 = jax.block_until_ready(flops_loss(x2, tile_b=16, tile_d=256))
    ref2 = jnp.sum(jnp.mean(jnp.abs(x2), axis=0) ** 2)
    assert jnp.allclose(r2, ref2, rtol=1e-5, atol=1e-5), (r2, ref2)

    # Ragged shape (exercises the zero-padding of both B and D).
    B3, D3 = 10, 300
    x3 = jax.random.normal(jax.random.PRNGKey(2), (B3, D3), dtype=jnp.float32)
    r3 = jax.block_until_ready(flops_loss(x3))
    ref3 = jnp.sum(jnp.mean(jnp.abs(x3), axis=0) ** 2)
    assert jnp.allclose(r3, ref3, rtol=1e-5, atol=1e-5), (r3, ref3)

    print("KERNEL_OK")
</pallas_src>

<mosaic_0001>
module attributes {stable_mosaic.version = 11 : i64} {
  func.func @_flops_kernel_single(%arg0: i32, %arg1: memref<8x256xf32, #tpu.memory_space<vmem>>, %arg2: memref<1x256xf32, #tpu.memory_space<vmem>>) attributes {dimension_semantics = [#tpu.dimension_semantics<parallel>], iteration_bounds = array<i64: 1>, scalar_prefetch = 0 : i64, scratch_operands = 0 : i64, tpu.core_type = #tpu.core_type<tc>, window_params = [{transform_indices = @transform_0, window_bounds = array<i64: 8, 256>}, {transform_indices = @transform_1, window_bounds = array<i64: 1, 256>}]} {
    %c0 = arith.constant 0 : index
    %c0_0 = arith.constant 0 : index
    %0 = vector.load %arg1[%c0, %c0_0] : memref<8x256xf32, #tpu.memory_space<vmem>>, vector<8x256xf32>
    %1 = math.absf %0 : vector<8x256xf32>
    %cst = arith.constant dense<0.000000e+00> : vector<256xf32>
    %2 = vector.multi_reduction <add>, %1, %cst [0] : vector<8x256xf32> to vector<256xf32>
    %3 = vector.shape_cast %2 : vector<256xf32> to vector<1x256xf32>
    %cst_1 = arith.constant 1.250000e-01 : f32
    %4 = vector.broadcast %cst_1 : f32 to vector<1x256xf32>
    %5 = arith.mulf %3, %4 : vector<1x256xf32>
    %6 = arith.mulf %5, %5 : vector<1x256xf32>
    %c0_2 = arith.constant 0 : index
    %c0_3 = arith.constant 0 : index
    %7 = vector.load %arg2[%c0_2, %c0_3] : memref<1x256xf32, #tpu.memory_space<vmem>>, vector<1x256xf32>
    tpu.vector_store %arg2[%c0_2, %c0_3], %6 {strides = array<i32>} : memref<1x256xf32, #tpu.memory_space<vmem>>, vector<1x256xf32>,
    return
  }
  func.func @transform_0(%arg0: i32) -> (i32, i32) {
    %c0_i32 = arith.constant 0 : i32
    %c0_i32_0 = arith.constant 0 : i32
    return %c0_i32, %arg0 : i32, i32
  }
  func.func @transform_1(%arg0: i32) -> (i32, i32) {
    %c0_i32 = arith.constant 0 : i32
    %c0_i32_0 = arith.constant 0 : i32
    return %c0_i32, %arg0 : i32, i32
  }
}

</mosaic_0001>

<bundles_post_ra>
// kernel: tpu_custom_call.1
= control target key start
LH: loop header
LB: loop body
LE: loop exit
PB: predicated region body
PF: predicated region fallthrough
CT: control target
= control target key end

     0   :  { %6 = vsyncpa [#allocation3], 0  ;;  %s167_s0 = inlined_call_operand.hbm [shape: f32[8,256], index: 0, kind: input, shape index: {}]   ;;  %s168_s1 = inlined_call_operand.hbm [shape: f32[1,256], index: 1, kind: output, shape index: {}]  }
   0x1   :  { %7 = vsyncpa [#allocation4], 0  ;;  %s130_s6 = smov [#allocation2]   ;;  %s82_s10 = scalar_lea.hbm %s167_s0, 256 }
   0x2   :  { %s14_s7 = sshll.u32 %s130_s6, 4  ;;  %p83_p0 = scmp.ne.s32.totalorder %s167_s0, %s82_s10  ;;  %s15_s7 = int_to_ptr.vmem [resolvable:$true] %s14_s7 }
   0x3   :  { %p86_p1 = scmp.lt.u32.totalorder %s82_s10, %s167_s0 }
   0x5   :  { %p88_p2 = pnand %p86_p1, %p83_p0 }
   0x7   :  { %91 = shalt.err (!%p88_p2)
}
   0x8   :  { %s92_s15 = scalar_lea.vmem %s15_s7, 256  ;;  %p97_p4 = scmp.lt.s32.totalorder %s15_s7, %s15_s7 }
   0x9   :  { %p93_p3 = scmp.ne.s32.totalorder %s15_s7, %s92_s15  ;;  %p98_p5 = scmp.lt.s32.totalorder %s92_s15, %s92_s15 }
   0xb   :  { %p99_p6 = por %p98_p5, %p97_p4 }
   0xd   :  { %p100_p7 = pnand %p99_p6, %p93_p3 }
   0xf   :  { %103 = shalt.err (!%p100_p7)
}
  0x10   :  { %17 = dma.hbm_to_vmem [thread:$0]  %s167_s0, 256, %s15_s7, [#allocation3]  }
  0x11   :  { %126 = dma.done.wait [#allocation3], 256  }
  0x12   :  { %127 = vsyncadd [#allocation3], 4294967040  ;;  %v21_v0 = vld [vmem:[#allocation2] sm:$0xff]  ;;  %v22_v1 = vld [vmem:[#allocation2 + $0x8] sm:$0xff]  ;;  %v131_v12 = vmov 1966171168   ;;  %v47_v14 = vlaneseq }
  0x13   :  { %v23_v2 = vand.u32 2147483647, %v21_v0  ;;  %v24_v3 = vand.u32 2147483647, %v22_v1  ;;  %v45_v13 = vunpack.c.l.s4 %v131_v12  ;;  %s132_s0 = smov [#allocation5]  }
  0x14   :  { %v48_v20 = vshrl.u32 %v47_v14, 7  ;;  %s70_s18 = sshll.u32 %s132_s0, 4  ;;  %vm61_vm0 = vcmp.lt.s32.totalorder %v47_v14, 256  ;;  %s71_s18 = int_to_ptr.vmem [resolvable:$true] %s70_s18 }
  0x15   :  { %v25_v4 = vrot.slane %v23_v2, 4  ;;  %v31_v5 = vrot.slane %v24_v3, 4  ;;  %v46_v19 = vunpack.c.0.s8 %v45_v13  ;;  %s104_s19 = scalar_lea.vmem %s71_s18, 32  ;;  %p109_p9 = scmp.lt.s32.totalorder %s71_s18, %s71_s18 }
  0x16   :  { %p105_p8 = scmp.ne.s32.totalorder %s71_s18, %s104_s19  ;;  %p110_p10 = scmp.lt.s32.totalorder %s104_s19, %s104_s19 }
  0x17   :  { %v26_v6 = vadd.f32 %v25_v4, %v23_v2  ;;  %v32_v7 = vadd.f32 %v31_v5, %v24_v3  ;;  %v49_v25 = vsub.s32 %v46_v19, %v48_v20 }
  0x18   :  { %p111_p11 = por %p110_p10, %p109_p9 }
  0x19   :  { %v27_v8 = vrot.slane %v26_v6, 2  ;;  %v33_v9 = vrot.slane %v32_v7, 2 }
  0x1a   :  { %p112_p12 = pnand %p111_p11, %p105_p8 }
  0x1b   :  { %v28_v10 = vadd.f32 %v27_v8, %v26_v6  ;;  %v34_v11 = vadd.f32 %v33_v9, %v32_v7 }
  0x1d   :  { %v29_v15 = vrot.slane %v28_v10, 1  ;;  %v35_v16 = vrot.slane %v34_v11, 1 }
  0x1f   :  { %v30_v17 = vadd.f32 %v29_v15, %v28_v10  ;;  %v36_v18 = vadd.f32 %v35_v16, %v34_v11 }
  0x21   :  { %v37_v21 = vmul.f32 0.125, %v30_v17  ;;  %v38_v22 = vmul.f32 0.125, %v36_v18 }
  0x23   :  { %v39_v23 = vmul.f32 %v37_v21, %v37_v21  ;;  %v40_v24 = vmul.f32 %v38_v22, %v38_v22 }
  0x25   :  { %v43_v26 = vcombine.low %v39_v23, %v40_v24 }
  0x27   :  { %v50_v27 = vrot.slane %v43_v26, %v49_v25 }
  0x29   :  { %v57_v28 = vrot.slane %v50_v27, %v49_v25 }
  0x2b   :  { %63 = vst.msk [vmem:[#allocation5] sm:$0x3] %vm61_vm0, %v57_v28 }
  0x2c   :  { %115 = shalt.err (!%p112_p12)
}
  0x2d   :  { %s116_s22 = scalar_lea.hbm %s168_s1, 32 }
  0x2e   :  { %p117_p13 = scmp.ne.s32.totalorder %s168_s1, %s116_s22  ;;  %p120_p0 = scmp.lt.u32.totalorder %s116_s22, %s168_s1 }
  0x30   :  { %p122_p1 = pnand %p120_p0, %p117_p13 }
  0x32   :  { %125 = shalt.err (!%p122_p1)
}
  0x33   :  { %73 = dma.vmem_to_hbm [thread:$0]  %s71_s18, 32, %s168_s1, [#allocation4]  }
  0x34   :  { %128 = dma.done.wait [#allocation4], 32  }
  0x35   :  { %129 = vsyncadd [#allocation4], 4294967264 }
  0x36   :  { %77 = vsyncpa [#allocation3], 1 }
  0x37   :  { %78 = vsyncpa [#allocation4], 1 }

</bundles_post_ra>
